<compile_context>
chip_gen: v5e
topology: v5e:2x2
jax: 0.10.0
libtpu: 0.0.40
codegen_flags: <defaults>
</compile_context>

<pallas_src>
import math

import jax
import jax.numpy as jnp
from jax.experimental import pallas as pl
from jax.experimental.pallas import tpu as pltpu


def data_embedding_kernel(x_ref, w_ref, pe_ref, o_ref):
    # x_ref : (L, C)     one batch element (batch dim squeezed out)
    # w_ref : (3C, dD)   fused conv taps [W0; W1; W2] for this d_model tile
    # pe_ref: (L, dD)    positional-embedding tile
    # o_ref : (L, dD)
    L = x_ref.shape[0]
    x = x_ref[...].astype(jnp.float32)

    # Circular +/-1 shifts along the sequence axis (XLU, no HBM traffic).
    x_prev = pltpu.roll(x, shift=1, axis=0)        # x[t-1]
    x_next = pltpu.roll(x, shift=L - 1, axis=0)    # x[t+1]  (roll by -1)

    # Fused tap matmul: out[t] = W0 @ x[t-1] + W1 @ x[t] + W2 @ x[t+1]
    x_cat = jnp.concatenate([x_prev, x, x_next], axis=-1)               # (L, 3C)
    acc = jnp.dot(x_cat, w_ref[...], preferred_element_type=jnp.float32)

    # Positional-embedding add in f32 (v5e VPU has no bf16); cast only at store.
    o_ref[...] = (acc + pe_ref[...]).astype(o_ref.dtype)


def make_positional_embedding(seq_len, d_model):
    assert d_model % 2 == 0, "d_model must be even (same as torch PositionalEmbedding)"
    pos = jnp.arange(seq_len, dtype=jnp.float32)[:, None]                 # (L, 1)
    div = jnp.exp(jnp.arange(0, d_model, 2, dtype=jnp.float32)
                  * (-math.log(10000.0) / d_model))                       # (D/2,)
    ang = pos * div                                                       # (L, D/2)
    # Interleave sin/cos -> columns 0::2 = sin, 1::2 = cos (stack+reshape, no scatter).
    return jnp.stack([jnp.sin(ang), jnp.cos(ang)], axis=-1).reshape(seq_len, d_model)


def prepare_embedding_params(conv_weight, seq_len):
    """Hoisted out of the per-call path: fused conv weights + PE table.

    conv_weight: (d_model, c_in, 3) torch Conv1d layout.
    Returns w_fused (3*c_in, d_model) with row block k multiplying x[t-1+k], and
    pe (seq_len, d_model).
    """
    d_model, c_in, k = conv_weight.shape
    assert k == 3
    w_fused = jnp.transpose(conv_weight, (2, 1, 0)).reshape(3 * c_in, d_model)
    w_fused = w_fused.astype(jnp.float32)
    pe = make_positional_embedding(seq_len, d_model)
    return w_fused, pe


def data_embedding(x, w_fused, pe, *, d_block=None, out_dtype=None):
    """x: (B, L, c_in); w_fused: (3*c_in, d_model); pe: (L, d_model)."""
    B, L, C = x.shape
    threeC, D = w_fused.shape
    assert threeC == 3 * C and pe.shape == (L, D)
    out_dtype = out_dtype if out_dtype is not None else x.dtype

    # Lane-dense d_model tiles (multiple of 128) -> unmasked stores; the second
    # parallel grid axis also lets v7x's two TensorCores share the work.
    if d_block is None:
        d_block = 128 if D % 128 == 0 else D
    assert D % d_block == 0
    nd = D // d_block

    flops = 2 * B * L * (3 * C) * D
    bytes_accessed = (x.size * x.dtype.itemsize
                      + w_fused.size * 4
                      + pe.size * 4
                      + B * L * D * jnp.dtype(out_dtype).itemsize)

    return pl.pallas_call(
        data_embedding_kernel,
        out_shape=jax.ShapeDtypeStruct((B, L, D), out_dtype),
        grid_spec=pltpu.PrefetchScalarGridSpec(
            num_scalar_prefetch=0,
            grid=(B, nd),
            in_specs=[
                pl.BlockSpec((pl.Squeezed(), L, C), lambda b, j: (b, 0, 0)),
                pl.BlockSpec((3 * C, d_block), lambda b, j: (0, j)),
                pl.BlockSpec((L, d_block), lambda b, j: (0, j)),
            ],
            out_specs=pl.BlockSpec((pl.Squeezed(), L, d_block),
                                   lambda b, j: (b, 0, j)),
        ),
        compiler_params=pltpu.CompilerParams(
            dimension_semantics=("parallel", "parallel"),
            # NOTE: if L*d_block tiles are grown (long sequences), raise
            # vmem_limit_bytes here; size against 64 MiB physical on v7x.
        ),
        cost_estimate=pl.CostEstimate(flops=flops, transcendentals=0,
                                      bytes_accessed=bytes_accessed),
    )(x, w_fused, pe)


def reference(x, conv_weight):
    """Pure-JAX reference matching torch semantics exactly."""
    B, L, C = x.shape
    D = conv_weight.shape[0]
    w = jnp.transpose(conv_weight, (2, 1, 0)).astype(jnp.float32)  # (3, C, D)
    x_prev = jnp.roll(x, 1, axis=1)    # x[t-1]
    x_next = jnp.roll(x, -1, axis=1)   # x[t+1]
    tok = (jnp.einsum("blc,cd->bld", x_prev, w[0])
           + jnp.einsum("blc,cd->bld", x, w[1])
           + jnp.einsum("blc,cd->bld", x_next, w[2]))
    return tok + make_positional_embedding(L, D)[None, :, :]


if __name__ == "__main__":
    # d_model chosen as a multiple of 128 so output stores are lane-dense.
    B, L, C, D = 2, 16, 4, 128
    key = jax.random.PRNGKey(0)
    kx, kw = jax.random.split(key)

    x = jax.random.normal(kx, (B, L, C), dtype=jnp.float32)

    # kaiming_normal_(fan_in, leaky_relu): gain = sqrt(2/(1+0.01^2)), fan_in = C*3
    fan_in = C * 3
    gain = math.sqrt(2.0 / (1.0 + 0.01 ** 2))
    std = gain / math.sqrt(fan_in)
    conv_weight = std * jax.random.normal(kw, (D, C, 3), dtype=jnp.float32)

    w_fused, pe = prepare_embedding_params(conv_weight, L)  # hoisted, reusable
    out = jax.block_until_ready(data_embedding(x, w_fused, pe))

    ref = jax.block_until_ready(reference(x, conv_weight))
    assert out.shape == (B, L, D)
    assert jnp.allclose(out, ref, atol=1e-4, rtol=1e-4), "mismatch vs reference"

    print("KERNEL_OK")
</pallas_src>

<mosaic_0001>
module attributes {stable_mosaic.version = 11 : i64} {
  func.func @data_embedding_kernel(%arg0: i32, %arg1: i32, %arg2: memref<1x16x4xf32, #tpu.memory_space<vmem>>, %arg3: memref<12x128xf32, #tpu.memory_space<vmem>>, %arg4: memref<16x128xf32, #tpu.memory_space<vmem>>, %arg5: memref<1x16x128xf32, #tpu.memory_space<vmem>>) attributes {dimension_semantics = [#tpu.dimension_semantics<parallel>, #tpu.dimension_semantics<parallel>], iteration_bounds = array<i64: 2, 1>, scalar_prefetch = 0 : i64, scratch_operands = 0 : i64, tpu.core_type = #tpu.core_type<tc>, window_params = [{transform_indices = @transform_0, window_bounds = array<i64: 1, 16, 4>}, {transform_indices = @transform_1, window_bounds = array<i64: 12, 128>}, {transform_indices = @transform_2, window_bounds = array<i64: 16, 128>}, {transform_indices = @transform_3, window_bounds = array<i64: 1, 16, 128>}]} {
    %c0 = arith.constant 0 : index
    %c0_0 = arith.constant 0 : index
    %c0_1 = arith.constant 0 : index
    %0 = vector.load %arg2[%c0, %c0_0, %c0_1] : memref<1x16x4xf32, #tpu.memory_space<vmem>>, vector<1x16x4xf32>
    %1 = vector.shape_cast %0 : vector<1x16x4xf32> to vector<16x4xf32>
    %c1_i32 = arith.constant 1 : i32
    %2 = tpu.dynamic_rotate %1 by %c1_i32 dim 0 : vector<16x4xf32>, i32 -> vector<16x4xf32>
    %c15_i32 = arith.constant 15 : i32
    %3 = tpu.dynamic_rotate %1 by %c15_i32 dim 0 : vector<16x4xf32>, i32 -> vector<16x4xf32>
    %4 = tpu.concatenate %2, %1, %3 in 1 : vector<16x4xf32>, vector<16x4xf32>, vector<16x4xf32> -> vector<16x12xf32>
    %c0_2 = arith.constant 0 : index
    %c0_3 = arith.constant 0 : index
    %5 = vector.load %arg3[%c0_2, %c0_3] : memref<12x128xf32, #tpu.memory_space<vmem>>, vector<12x128xf32>
    %cst = arith.constant dense<0.000000e+00> : vector<16x128xf32>
    %6 = tpu.matmul %4, %5, %cst {dimension_numbers = #tpu.dot_dimension_numbers<[1], [0], [0], [1], [0, 0, 1, 1], [], []>} : vector<16x12xf32>, vector<12x128xf32>, vector<16x128xf32> -> vector<16x128xf32>
    %c0_4 = arith.constant 0 : index
    %c0_5 = arith.constant 0 : index
    %7 = vector.load %arg4[%c0_4, %c0_5] : memref<16x128xf32, #tpu.memory_space<vmem>>, vector<16x128xf32>
    %8 = arith.addf %6, %7 : vector<16x128xf32>
    %c0_6 = arith.constant 0 : index
    %c0_7 = arith.constant 0 : index
    %c0_8 = arith.constant 0 : index
    %9 = vector.load %arg5[%c0_6, %c0_7, %c0_8] : memref<1x16x128xf32, #tpu.memory_space<vmem>>, vector<1x16x128xf32>
    %10 = vector.shape_cast %9 : vector<1x16x128xf32> to vector<16x128xf32>
    %11 = vector.shape_cast %8 : vector<16x128xf32> to vector<1x16x128xf32>
    tpu.vector_store %arg5[%c0_6, %c0_7, %c0_8], %11 {strides = array<i32>} : memref<1x16x128xf32, #tpu.memory_space<vmem>>, vector<1x16x128xf32>,
    return
  }
  func.func @transform_0(%arg0: i32, %arg1: i32) -> (i32, i32, i32) {
    %c0_i32 = arith.constant 0 : i32
    %c0_i32_0 = arith.constant 0 : i32
    %c0_i32_1 = arith.constant 0 : i32
    return %arg0, %c0_i32, %c0_i32_0 : i32, i32, i32
  }
  func.func @transform_1(%arg0: i32, %arg1: i32) -> (i32, i32) {
    %c0_i32 = arith.constant 0 : i32
    %c0_i32_0 = arith.constant 0 : i32
    return %c0_i32, %arg1 : i32, i32
  }
  func.func @transform_2(%arg0: i32, %arg1: i32) -> (i32, i32) {
    %c0_i32 = arith.constant 0 : i32
    %c0_i32_0 = arith.constant 0 : i32
    return %c0_i32, %arg1 : i32, i32
  }
  func.func @transform_3(%arg0: i32, %arg1: i32) -> (i32, i32, i32) {
    %c0_i32 = arith.constant 0 : i32
    %c0_i32_0 = arith.constant 0 : i32
    return %arg0, %c0_i32, %arg1 : i32, i32, i32
  }
}

</mosaic_0001>

<bundles_post_ra>
// kernel: tpu_custom_call.1
= control target key start
LH: loop header
LB: loop body
LE: loop exit
PB: predicated region body
PF: predicated region fallthrough
CT: control target
= control target key end

     0   :  { %8 = vsyncpa [#allocation3], 0  ;;  %s707_s0 = inlined_call_operand.vmem [shape: f32[2,16,4], index: 0, kind: input, shape index: {}]   ;;  %s708_s1 = inlined_call_operand.vmem [shape: f32[12,128], index: 1, kind: input, shape index: {}]   ;;  %s709_s2 = inlined_call_operand.vmem [shape: f32[16,128], index: 2, kind: input, shape index: {}]   ;;  %s710_s3 = inlined_call_operand.hbm [shape: f32[2,16,128], index: 3, kind: output, shape index: {}]  }
   0x1   :  { %10 = vsyncpa [#allocation3 + $0x1], 0  ;;  %s595_s12 = smov 0   ;;  %s597_s13 = smov 0  }
   0x2   :  { %s599_s14 = smov 0   ;;  %s601_s15 = smov 0  }
   0x3   :  { %s603_s16 = smov 0   ;;  %s605_s17 = smov 0  }
   0x4 LB: > { %s412_s18 = sadd.s32 4294967295, %s570_s17   ;;  %s413_s19 = sadd.s32 4294967294, %s570_s17   ;;  %s570_s17 = sphi %s605_s17, %s16_s17   ;;  %s566_s16 = sphi %s603_s16, %s717_s16   ;;  %s562_s15 = sphi %s601_s15, %s716_s15   ;;  %s558_s14 = sphi %s599_s14, %s715_s14   ;;  %s554_s13 = sphi %s597_s13, %s714_s13   ;;  %s550_s12 = sphi %s595_s12, %s713_s12  }
   0x5   : > { %s28_s20 = sadd.s32 1, %s566_s16  ;;  %s115_s21 = sadd.s32 1, %s558_s14 }
   0x6   : > { %p30_p0 = scmp.ge.s32.totalorder %s28_s20, 2  ;;  %p125_p1 = scmp.ne.s32.totalorder %s558_s14, %s554_s13 }
   0x7   : > { %p126_p2 = scmp.eq.s32.totalorder %s412_s18, 1  ;;  %p131_p3 = scmp.ne.s32.totalorder %s554_s13, %s550_s12 }
   0x8   : > { %s719_s20 = smov (%p30_p0, %s28_s20), 0  ;;  %p132_p5 = scmp.eq.s32.totalorder %s413_s19, 1 }
   0x9   : > { %p635_p4 = por %p126_p2, %p125_p1  ;;  %s110_s23 = ssub.s32 %s566_s16, %s719_s20 }
   0xa   : > { %p418_p6 = scmp.ge.s32.totalorder %s570_s17, 1  ;;  %p113_p7 = scmp.eq.s32.totalorder %s110_s23, 0 }
   0xb   : > { %p642_p8 = por %p132_p5, %p131_p3  ;;  %p172_p9 = scmp.lt.s32.totalorder %s570_s17, 3 }
   0xc   : > { %s648_s25 = scalar_select %p113_p7, %s558_s14, %s115_s21  }
   0xd   : > { %p173_p10 = pnand %p418_p6, %p172_p9 }
   0xe   : > { %p204_p11 = scmp.lt.s32.totalorder (!%p173_p10), %s562_s15, 1  ;;  %s572_s6 = smov (!%p173_p10), 4  }
   0xf   : > { %176 = sbr.rel (%p173_p10) target bundleno = 284 (0x11c), region = 32  ;;  %s573_s7 = smov (!%p173_p10), 8  }
  0x10   : > { %s201_s10 = sand.u32 (!%p173_p10), 1, %s554_s13   ;;  %s431_s21 = sshll.u32 (!%p173_p10), %s562_s15, 4 }
  0x11   : > { %s419_s11 = sshll.u32 (!%p173_p10), %s201_s10, 4  ;;  %s512_s18 = scalar_lea.hbm (!%p173_p10), %s710_s3, 32 }
  0x12   : > { %s203_s23 = scalar_lea.vmem (!%p173_p10), [#allocation2], %s419_s11 }
  0x14   : > { %v221_v0 = vlaneseq  ;;  %v254_v1 = vld [vmem:[%s708_s1 + $0x8] sm:$0xf]  ;;  %vm264_vm0 = vcmask 1043456   ;;  %s205_s28 = scalar_select %p204_p11, %s562_s15, 1  ;;  %v253_v12 = vld [vmem:[%s708_s1] sm:$0xff]  ;;  %vm247_vm3 = vcmask 31744  }
  0x15   : > { %422 = vmatpush.msk.msra.mxu0 %vm264_vm0, %v254_v1  ;;  %432 = vmatpush.msk.msra.mxu1 %vm264_vm0, %v254_v1  ;;  %vm250_vm4 = vcmask 64512   ;;  %vm257_vm5 = vcmask 97280   ;;  %v255_v22 = vld [vmem:[%s709_s2] sm:$0xff]  ;;  %v256_v25 = vld [vmem:[%s709_s2 + $0x8] sm:$0xff]  ;;  %s294_s15 = scalar_lea.sflag [#allocation3], %s201_s10 }
  0x16   : > { %v222_v2 = vshrl.u32 %v221_v0, 7  ;;  %s430_s29 = sshll.u32 %s205_s28, 4  ;;  %s306_s28 = scalar_lea.hbm %s710_s3, %s431_s21 }
  0x17   : > { %s208_s5 = scalar_lea.vmem %s707_s0, %s430_s29  ;;  %283 = vmatpush.msra.mxu0 %v253_v12  ;;  %433 = vmatpush.msra.mxu1 %v253_v12  ;;  %s307_s29 = sshll.u32 %s203_s23, 4  ;;  %s308_s29 = int_to_ptr.vmem [resolvable:$true] %s307_s29 }
  0x18   : > { %v217_v3 = vld [vmem:[%s208_s5] sm:$0xff]  ;;  %v218_v4 = vld [vmem:[%s208_s5 + $0x8] sm:$0xff]  ;;  %vm228_vm1 = vcmp.lt.s32.totalorder %v222_v2, 7  ;;  %vm223_vm2 = vcmp.lt.s32.totalorder %v222_v2, 1  ;;  %s309_s5 = sshll.u32 %s306_s28, 4  ;;  %s310_s5 = int_to_ptr.hbm [resolvable:$true] %s309_s5 }
  0x19   : > { %233 = vrot.lane.b32.xlu0 %v217_v3, %s572_s6  ;;  %v226_v5 = vrot.slane %v217_v3, 1  ;;  %v227_v6 = vrot.slane %v218_v4, 1  ;;  %v220_v9 = vrot.slane %v218_v4, 7  ;;  %v219_v10 = vrot.slane %v217_v3, 7 }
  0x1b   : > { %v229_v7 = vsel %vm228_vm1, %v226_v5, %v227_v6  ;;  %v230_v8 = vsel %vm228_vm1, %v227_v6, %v226_v5  ;;  %v225_v11 = vsel %vm223_vm2, %v220_v9, %v219_v10  ;;  %v224_v13 = vsel %vm223_vm2, %v219_v10, %v220_v9 }
  0x1c   : > { %241 = vrot.lane.b32.xlu1 %v229_v7, %s573_s7 }
  0x21   : > { %235 = vrot.lane.b32.xlu0 %v218_v4, %s572_s6  ;;  %s506_s6 = sshra.s32 %s310_s5, 4  ;;  %s507_s6 = int_to_ptr.hbm [resolvable:$true] %s506_s6 }
  0x22   : > { %s508_s8 = scalar_lea.hbm %s507_s6, 16  ;;  %p513_p1 = scmp.lt.s32.totalorder %s507_s6, %s710_s3 }
  0x23   : > { %p509_p12 = scmp.ne.s32.totalorder %s507_s6, %s508_s8  ;;  %p514_p2 = scmp.lt.s32.totalorder %s512_s18, %s508_s8 }
  0x24   : > { %243 = vrot.lane.b32.xlu1 %v230_v8, %s573_s7 }
  0x25   : > { %p510_p13 = pnand %p509_p12, %p635_p4  ;;  %p515_p3 = por %p514_p2, %p513_p1 }
  0x27   : > { %p511_p0 = pneg %p510_p13 }
  0x29   : > { %p516_p5 = pnand %p515_p3, %p511_p0 }
  0x8b   : > { %v234_v14 = vpop.permute.xlu0 %233 }
  0x8c   : > { %v248_v15 = vsel %vm247_vm3, %v225_v11, %v234_v14 }
  0x8e   : > { %v242_v16 = vpop.permute.xlu1 %241 }
  0x8f   : > { %v251_v17 = vsel %vm250_vm4, %v248_v15, %v242_v16 }
  0x90   : > { %423 = vmatmul.msk.f32.vlgmr.msra.gmra.mxu0 %vm257_vm5, %v251_v17 }
  0x93   : > { %v236_v18 = vpop.permute.xlu0 %235 }
  0x94   : > { %v249_v19 = vsel %vm247_vm3, %v224_v13, %v236_v18 }
  0x96   : > { %v244_v20 = vpop.permute.xlu1 %243 }
  0x97   : > { %v252_v21 = vsel %vm250_vm4, %v249_v19, %v244_v20 }
  0x98   : > { %424 = vmatmul.msk.f32.vlgmr.msra.gmra.mxu1 %vm257_vm5, %v252_v21 }
 0x10d   : > { %v285_v23 = vpop.f32.mrf.mxu0 }
 0x10e   : > { %v286_v24 = vadd.f32 %v285_v23, %v255_v22 }
 0x110   : > { %291 = vst [vmem:[%s203_s23] sm:$0xff] %v286_v24 }
 0x115   : > { %v288_v26 = vpop.f32.mrf.mxu1 }
 0x116   : > { %v289_v27 = vadd.f32 %v288_v26, %v256_v25 }
 0x118   : > { %292 = vst [vmem:[%s203_s23 + $0x8] sm:$0xff] %v289_v27 }
 0x119   : > { %519 = shalt.err (!%p516_p5)
}
 0x11a   : > { %s574_s10 = smov 128  }
 0x11b   : > { %434 = dma.vmem_to_hbm [thread:$0]  (%p635_p4), %s308_s29, 256, %s310_s5, %s294_s15, %s574_s10, %s574_s10, %s573_s7  }
 0x11c PF: > { %p440_p6 = scmp.ge.s32.totalorder %s570_s17, 2  ;;  %s324_s23 = sand.u32 1, %s550_s12  }
 0x11d   : > { %s325_s26 = scalar_lea.sflag [#allocation3], %s324_s23 }
 0x11e   : > { %p437_p7 = pnand %p440_p6, %p642_p8 }
 0x120   : > { %p438_p9 = pneg %p437_p7 }
 0x122   : > { %545 = dma.done.wait (%p438_p9), %s325_s26, 256  }
 0x123   : > { %547 = vsyncadd (%p438_p9), %s325_s26, 4294967040  ;;  %s16_s17 = sadd.s32 1, %s570_s17   ;;  %s713_s12 = smov %s554_s13 }
 0x124   : > { %p13_p10 = scmp.ge.s32.totalorder %s16_s17, 4   ;;  %s714_s13 = smov %s558_s14 }
 0x125   : > { %s715_s14 = smov %s648_s25  ;;  %s716_s15 = smov %s566_s16 }
 0x126   : > { %s717_s16 = smov %s719_s20  ;;  %15 = sbr.rel (!%p13_p10) target bundleno = 4 (0x4), region = 73 }
 0x12b   :  { %331 = vsyncpa [#allocation3], 1 }
 0x12c   :  { %333 = vsyncpa [#allocation3 + $0x1], 1 }

</bundles_post_ra>
